<compile_context>
chip_gen: v7x
topology: tpu7x:2x2x1
jax: 0.10.0
libtpu: 0.0.40
codegen_flags: <defaults>
</compile_context>

<pallas_src>
import jax
import jax.numpy as jnp
from jax.experimental import pallas as pl
from jax.experimental.pallas import tpu as pltpu

HIDDEN = 256


def _round_up(x, m):
    return ((x + m - 1) // m) * m


# --------------------------------------------------------------------------- #
# Kernel bodies
# --------------------------------------------------------------------------- #
def _mlp(sa, mask, w1, b1, w2, b2, w3, b3):
    cdt = w1.dtype  # MXU operand dtype (bf16); accumulation is f32.
    # l1: single merged dot on the concatenated (state, action) block.
    h1 = jnp.dot(sa.astype(cdt), w1, preferred_element_type=jnp.float32)
    h1 = jnp.maximum(h1 + b1, 0.0)
    # l2
    h2 = jnp.dot(h1.astype(cdt), w2, preferred_element_type=jnp.float32) + b2
    if mask is not None:
        h2 = h2 * mask.astype(jnp.float32)   # broadcast (bt|1, 256|1) in-kernel
    h2 = jnp.maximum(h2, 0.0)
    # l3 on the MXU (N=1 tile): keeps the 256-wide reduction off the XLU.
    return jnp.dot(h2.astype(cdt), w3, preferred_element_type=jnp.float32) + b3


def _critic_kernel(sa_ref, w1_ref, b1_ref, w2_ref, b2_ref, w3_ref, b3_ref,
                   out_ref):
    out_ref[...] = _mlp(sa_ref[...], None,
                        w1_ref[...], b1_ref[...], w2_ref[...], b2_ref[...],
                        w3_ref[...], b3_ref[...])


def _critic_kernel_masked(sa_ref, mask_ref, w1_ref, b1_ref, w2_ref, b2_ref,
                          w3_ref, b3_ref, out_ref):
    out_ref[...] = _mlp(sa_ref[...], mask_ref[...],
                        w1_ref[...], b1_ref[...], w2_ref[...], b2_ref[...],
                        w3_ref[...], b3_ref[...])


# --------------------------------------------------------------------------- #
# Parameter preparation (one-time, outside the per-call path)
# --------------------------------------------------------------------------- #
def prepare_critic_params(params, compute_dtype=jnp.bfloat16):
    """PyTorch-layout (w: (out,in), b: (out,)) -> kernel layout, bf16 weights."""
    w1, b1, w2, b2, w3, b3 = [jnp.asarray(p) for p in params]
    return (w1.T.astype(compute_dtype),                     # (S+A, 256)
            jnp.asarray(b1, jnp.float32).reshape(1, HIDDEN),
            w2.T.astype(compute_dtype),                     # (256, 256)
            jnp.asarray(b2, jnp.float32).reshape(1, HIDDEN),
            w3.T.astype(compute_dtype),                     # (256, 1)  (l3 on MXU)
            jnp.asarray(b3, jnp.float32).reshape(1, 1))


def _normalize_mask(mask, B):
    """Accept mask shapes broadcastable to (B, 256) without inflating to f32."""
    mask = jnp.asarray(mask)
    if jnp.issubdtype(mask.dtype, jnp.bool_) or jnp.issubdtype(mask.dtype, jnp.integer):
        mask = mask.astype(jnp.bfloat16)     # exact for 0/1 masks, half the bytes
    if mask.ndim == 0:
        mask = mask.reshape(1, 1)
    elif mask.ndim == 1:
        mask = mask.reshape(1, -1)           # PyTorch broadcast semantics for 1-D
    if (mask.ndim != 2 or mask.shape[0] not in (1, B)
            or mask.shape[1] not in (1, HIDDEN)):
        raise ValueError(f"mask shape {mask.shape} not broadcastable to ({B}, {HIDDEN})")
    return mask


def _pick_batch_tile(B, block_b, align=8):
    """Batch tile: multiple of `align`, <= block_b, >= 2 grid steps when B > align."""
    if B <= align:
        return B                              # single full-extent block, no padding
    block_b = max(align, _round_up(block_b, align))
    bt = _round_up(pl.cdiv(B, 2), align)      # guarantees >= 2 grid steps (v7x megacore)
    return min(bt, block_b)


# --------------------------------------------------------------------------- #
# Forward wrapper
# --------------------------------------------------------------------------- #
def critic_forward(state, action, prepared_params, mask=None, block_b=1024):
    """Pallas implementation of Critic.forward(state, action, mask)."""
    w1, b1, w2, b2, w3, b3 = prepared_params
    state = jnp.asarray(state, jnp.float32)
    action = jnp.asarray(action, jnp.float32)
    B = state.shape[0]

    # Merged l1: one dot on the concatenated SA block (concat cost is negligible).
    sa = jnp.concatenate([state, action], axis=1)
    D = sa.shape[1]
    assert w1.shape[0] == D, "prepared w1 does not match state_dim + action_dim"

    if mask is not None:
        mask = _normalize_mask(mask, B)

    # Sub-32-bit batched masks: keep tile aligned to the bf16 sublane packing.
    align = 16 if (mask is not None and mask.shape[0] == B
                   and jnp.dtype(mask.dtype).itemsize < 4) else 8
    bt = _pick_batch_tile(B, block_b, align)
    grid = (pl.cdiv(B, bt),)                  # ragged tail handled by Pallas masking

    batched = lambda d: pl.BlockSpec((bt, d), lambda i: (i, 0))
    const = lambda shape: pl.BlockSpec(shape, lambda i: (0, 0))

    weight_specs = [const(w1.shape), const(b1.shape), const(w2.shape),
                    const(b2.shape), const(w3.shape), const(b3.shape)]
    weights = (w1, b1, w2, b2, w3, b3)

    if mask is None:
        kernel = _critic_kernel
        in_specs = [batched(D)] + weight_specs
        args = (sa,) + weights
    else:
        mb, mn = mask.shape
        mask_spec = batched(mn) if mb == B else const((1, mn))
        kernel = _critic_kernel_masked
        in_specs = [batched(D), mask_spec] + weight_specs
        args = (sa, mask) + weights

    return pl.pallas_call(
        kernel,
        out_shape=jax.ShapeDtypeStruct((B, 1), jnp.float32),
        grid=grid,
        in_specs=in_specs,
        out_specs=pl.BlockSpec((bt, 1), lambda i: (i, 0)),
        compiler_params=pltpu.CompilerParams(
            dimension_semantics=("parallel",)),
    )(*args)


# --------------------------------------------------------------------------- #
# Init + pure-JAX reference
# --------------------------------------------------------------------------- #
def init_critic_params(key, state_dim, action_dim):
    """Deterministic init mimicking nn.Linear's U(-1/sqrt(fan_in), ...)."""
    din = state_dim + action_dim
    keys = jax.random.split(key, 6)

    def lin(kw, kb, fan_in, fan_out):
        bound = 1.0 / jnp.sqrt(fan_in)
        w = jax.random.uniform(kw, (fan_out, fan_in), jnp.float32, -bound, bound)
        b = jax.random.uniform(kb, (fan_out,), jnp.float32, -bound, bound)
        return w, b

    w1, b1 = lin(keys[0], keys[1], din, HIDDEN)
    w2, b2 = lin(keys[2], keys[3], HIDDEN, HIDDEN)
    w3, b3 = lin(keys[4], keys[5], HIDDEN, 1)
    return (w1, b1, w2, b2, w3, b3)


def critic_forward_ref(state, action, params, mask=None):
    """Pure-JAX f32 reference (PyTorch-layout params)."""
    w1, b1, w2, b2, w3, b3 = params
    sa = jnp.concatenate([state, action], axis=1)
    q1 = jax.nn.relu(sa @ w1.T + b1)
    q1 = q1 @ w2.T + b2
    q1 = jax.nn.relu(mask * q1) if mask is not None else jax.nn.relu(q1)
    return q1 @ w3.T + b3


if __name__ == "__main__":
    key = jax.random.PRNGKey(0)
    k_param, k_state, k_action, k_mask = jax.random.split(key, 4)

    batch, state_dim, action_dim = 2, 12, 4
    params = init_critic_params(k_param, state_dim, action_dim)
    prepared = prepare_critic_params(params)          # one-time, not per call

    state = jax.random.normal(k_state, (batch, state_dim), jnp.float32)
    action = jax.random.normal(k_action, (batch, action_dim), jnp.float32)
    mask_bool = jax.random.uniform(k_mask, (batch, HIDDEN)) > 0.5

    # bf16 matmuls (f32 accumulation) -> loosened tolerance vs f32 reference.
    TOL = dict(atol=1e-2, rtol=1e-2)

    # mask=None path
    q_none = jax.block_until_ready(critic_forward(state, action, prepared, mask=None))
    ref_none = critic_forward_ref(state, action, params, mask=None)
    assert q_none.shape == (batch, 1)
    assert jnp.allclose(q_none, ref_none, **TOL), "mask=None mismatch"

    # masked path: bool mask passed directly (wrapper keeps it narrow, no f32 blow-up)
    q_mask = jax.block_until_ready(critic_forward(state, action, prepared, mask=mask_bool))
    ref_mask = critic_forward_ref(state, action, params, mask=mask_bool.astype(jnp.float32))
    assert q_mask.shape == (batch, 1)
    assert jnp.allclose(q_mask, ref_mask, **TOL), "masked mismatch"

    # multi-tile + ragged-tail path (B=20, bt=8 -> 3 grid steps, no wrapper padding)
    batch2 = 20
    k_s2, k_a2, k_m2 = jax.random.split(jax.random.PRNGKey(1), 3)
    state2 = jax.random.normal(k_s2, (batch2, state_dim), jnp.float32)
    action2 = jax.random.normal(k_a2, (batch2, action_dim), jnp.float32)
    mask2 = (jax.random.uniform(k_m2, (batch2, HIDDEN)) > 0.5).astype(jnp.float32)
    q2 = jax.block_until_ready(
        critic_forward(state2, action2, prepared, mask=mask2, block_b=8))
    ref2 = critic_forward_ref(state2, action2, params, mask=mask2)
    assert q2.shape == (batch2, 1)
    assert jnp.allclose(q2, ref2, **TOL), "tiled/ragged masked mismatch"

    # broadcast (1, 256) mask via constant BlockSpec, >=2 grid steps, no mask per row
    mask_row = (jax.random.uniform(k_m2, (1, HIDDEN)) > 0.5).astype(jnp.float32)
    q3 = jax.block_until_ready(critic_forward(state2, action2, prepared, mask=mask_row))
    ref3 = critic_forward_ref(state2, action2, params, mask=mask_row)
    assert q3.shape == (batch2, 1)
    assert jnp.allclose(q3, ref3, **TOL), "broadcast-mask mismatch"

    # no-mask multi-step path
    q4 = jax.block_until_ready(critic_forward(state2, action2, prepared, mask=None))
    ref4 = critic_forward_ref(state2, action2, params, mask=None)
    assert jnp.allclose(q4, ref4, **TOL), "no-mask multi-tile mismatch"

    print("KERNEL_OK")
</pallas_src>

<mosaic_0001>
module attributes {stable_mosaic.version = 11 : i64} {
  func.func @_critic_kernel(%arg0: i32, %arg1: memref<2x16xf32, #tpu.memory_space<vmem>>, %arg2: memref<16x256xbf16, #tpu.memory_space<vmem>>, %arg3: memref<1x256xf32, #tpu.memory_space<vmem>>, %arg4: memref<256x256xbf16, #tpu.memory_space<vmem>>, %arg5: memref<1x256xf32, #tpu.memory_space<vmem>>, %arg6: memref<256x1xbf16, #tpu.memory_space<vmem>>, %arg7: memref<1x1xf32, #tpu.memory_space<vmem>>, %arg8: memref<2x1xf32, #tpu.memory_space<vmem>>) attributes {dimension_semantics = [#tpu.dimension_semantics<parallel>], iteration_bounds = array<i64: 1>, scalar_prefetch = 0 : i64, scratch_operands = 0 : i64, tpu.core_type = #tpu.core_type<tc>, window_params = [{transform_indices = @transform_0, window_bounds = array<i64: 2, 16>}, {pipeline_mode = #tpu.pipeline_mode<synchronous>, transform_indices = @transform_1, window_bounds = array<i64: 16, 256>}, {pipeline_mode = #tpu.pipeline_mode<synchronous>, transform_indices = @transform_2, window_bounds = array<i64: 1, 256>}, {pipeline_mode = #tpu.pipeline_mode<synchronous>, transform_indices = @transform_3, window_bounds = array<i64: 256, 256>}, {pipeline_mode = #tpu.pipeline_mode<synchronous>, transform_indices = @transform_4, window_bounds = array<i64: 1, 256>}, {pipeline_mode = #tpu.pipeline_mode<synchronous>, transform_indices = @transform_5, window_bounds = array<i64: 256, 1>}, {pipeline_mode = #tpu.pipeline_mode<synchronous>, transform_indices = @transform_6, window_bounds = array<i64: 1, 1>}, {transform_indices = @transform_7, window_bounds = array<i64: 2, 1>}]} {
    %c0 = arith.constant 0 : index
    %c0_0 = arith.constant 0 : index
    %0 = vector.load %arg1[%c0, %c0_0] : memref<2x16xf32, #tpu.memory_space<vmem>>, vector<2x16xf32>
    %c0_1 = arith.constant 0 : index
    %c0_2 = arith.constant 0 : index
    %1 = vector.load %arg2[%c0_1, %c0_2] : memref<16x256xbf16, #tpu.memory_space<vmem>>, vector<16x256xbf16>
    %c0_3 = arith.constant 0 : index
    %c0_4 = arith.constant 0 : index
    %2 = vector.load %arg3[%c0_3, %c0_4] : memref<1x256xf32, #tpu.memory_space<vmem>>, vector<1x256xf32>
    %c0_5 = arith.constant 0 : index
    %c0_6 = arith.constant 0 : index
    %3 = vector.load %arg4[%c0_5, %c0_6] : memref<256x256xbf16, #tpu.memory_space<vmem>>, vector<256x256xbf16>
    %c0_7 = arith.constant 0 : index
    %c0_8 = arith.constant 0 : index
    %4 = vector.load %arg5[%c0_7, %c0_8] : memref<1x256xf32, #tpu.memory_space<vmem>>, vector<1x256xf32>
    %c0_9 = arith.constant 0 : index
    %c0_10 = arith.constant 0 : index
    %5 = vector.load %arg6[%c0_9, %c0_10] : memref<256x1xbf16, #tpu.memory_space<vmem>>, vector<256x1xbf16>
    %c0_11 = arith.constant 0 : index
    %c0_12 = arith.constant 0 : index
    %6 = vector.load %arg7[%c0_11, %c0_12] : memref<1x1xf32, #tpu.memory_space<vmem>>, vector<1x1xf32>
    %7 = arith.truncf %0 : vector<2x16xf32> to vector<2x16xbf16>
    %cst = arith.constant dense<0.000000e+00> : vector<2x256xf32>
    %8 = tpu.matmul %7, %1, %cst {dimension_numbers = #tpu.dot_dimension_numbers<[1], [0], [0], [1], [0, 0, 1, 1], [], []>} : vector<2x16xbf16>, vector<16x256xbf16>, vector<2x256xf32> -> vector<2x256xf32>
    %9 = vector.broadcast %2 : vector<1x256xf32> to vector<2x256xf32>
    %10 = arith.addf %8, %9 : vector<2x256xf32>
    %cst_13 = arith.constant 0.000000e+00 : f32
    %11 = vector.broadcast %cst_13 : f32 to vector<2x256xf32>
    %12 = arith.maximumf %10, %11 : vector<2x256xf32>
    %13 = arith.truncf %12 : vector<2x256xf32> to vector<2x256xbf16>
    %cst_14 = arith.constant dense<0.000000e+00> : vector<2x256xf32>
    %14 = tpu.matmul %13, %3, %cst_14 {dimension_numbers = #tpu.dot_dimension_numbers<[1], [0], [0], [1], [0, 0, 1, 1], [], []>} : vector<2x256xbf16>, vector<256x256xbf16>, vector<2x256xf32> -> vector<2x256xf32>
    %15 = vector.broadcast %4 : vector<1x256xf32> to vector<2x256xf32>
    %16 = arith.addf %14, %15 : vector<2x256xf32>
    %cst_15 = arith.constant 0.000000e+00 : f32
    %17 = vector.broadcast %cst_15 : f32 to vector<2x256xf32>
    %18 = arith.maximumf %16, %17 : vector<2x256xf32>
    %19 = arith.truncf %18 : vector<2x256xf32> to vector<2x256xbf16>
    %cst_16 = arith.constant dense<0.000000e+00> : vector<2x1xf32>
    %20 = tpu.matmul %19, %5, %cst_16 {dimension_numbers = #tpu.dot_dimension_numbers<[1], [0], [0], [1], [0, 0, 1, 1], [], []>} : vector<2x256xbf16>, vector<256x1xbf16>, vector<2x1xf32> -> vector<2x1xf32>
    %21 = vector.broadcast %6 : vector<1x1xf32> to vector<2x1xf32>
    %22 = arith.addf %20, %21 : vector<2x1xf32>
    %c0_17 = arith.constant 0 : index
    %c0_18 = arith.constant 0 : index
    %23 = vector.load %arg8[%c0_17, %c0_18] : memref<2x1xf32, #tpu.memory_space<vmem>>, vector<2x1xf32>
    tpu.vector_store %arg8[%c0_17, %c0_18], %22 {strides = array<i32>} : memref<2x1xf32, #tpu.memory_space<vmem>>, vector<2x1xf32>,
    return
  }
  func.func @transform_0(%arg0: i32) -> (i32, i32) {
    %c0_i32 = arith.constant 0 : i32
    %c0_i32_0 = arith.constant 0 : i32
    return %arg0, %c0_i32 : i32, i32
  }
  func.func @transform_1(%arg0: i32) -> (i32, i32) {
    %c0_i32 = arith.constant 0 : i32
    %c0_i32_0 = arith.constant 0 : i32
    %c0_i32_1 = arith.constant 0 : i32
    return %c0_i32, %c0_i32_0 : i32, i32
  }
  func.func @transform_2(%arg0: i32) -> (i32, i32) {
    %c0_i32 = arith.constant 0 : i32
    %c0_i32_0 = arith.constant 0 : i32
    %c0_i32_1 = arith.constant 0 : i32
    return %c0_i32, %c0_i32_0 : i32, i32
  }
  func.func @transform_3(%arg0: i32) -> (i32, i32) {
    %c0_i32 = arith.constant 0 : i32
    %c0_i32_0 = arith.constant 0 : i32
    %c0_i32_1 = arith.constant 0 : i32
    return %c0_i32, %c0_i32_0 : i32, i32
  }
  func.func @transform_4(%arg0: i32) -> (i32, i32) {
    %c0_i32 = arith.constant 0 : i32
    %c0_i32_0 = arith.constant 0 : i32
    %c0_i32_1 = arith.constant 0 : i32
    return %c0_i32, %c0_i32_0 : i32, i32
  }
  func.func @transform_5(%arg0: i32) -> (i32, i32) {
    %c0_i32 = arith.constant 0 : i32
    %c0_i32_0 = arith.constant 0 : i32
    %c0_i32_1 = arith.constant 0 : i32
    return %c0_i32, %c0_i32_0 : i32, i32
  }
  func.func @transform_6(%arg0: i32) -> (i32, i32) {
    %c0_i32 = arith.constant 0 : i32
    %c0_i32_0 = arith.constant 0 : i32
    %c0_i32_1 = arith.constant 0 : i32
    return %c0_i32, %c0_i32_0 : i32, i32
  }
  func.func @transform_7(%arg0: i32) -> (i32, i32) {
    %c0_i32 = arith.constant 0 : i32
    %c0_i32_0 = arith.constant 0 : i32
    return %arg0, %c0_i32 : i32, i32
  }
}

</mosaic_0001>

<bundles_post_ra>
// kernel: tpu_custom_call.1
= control target key start
LH: loop header
LB: loop body
LE: loop exit
PB: predicated region body
PF: predicated region fallthrough
CT: control target
= control target key end

     0   :  { %s843_s0 = inlined_call_operand.vmem [shape: f32[2,16], index: 0, kind: input, shape index: {}]   ;;  %s844_s1 = inlined_call_operand.vmem [shape: bf16[16,256], index: 1, kind: input, shape index: {}]   ;;  %s845_s2 = inlined_call_operand.vmem [shape: f32[1,256], index: 2, kind: input, shape index: {}]   ;;  %s846_s3 = inlined_call_operand.hbm [shape: bf16[256,256], index: 3, kind: input, shape index: {}]   ;;  %s847_s4 = inlined_call_operand.vmem [shape: f32[1,256], index: 4, kind: input, shape index: {}]   ;;  %s848_s5 = inlined_call_operand.vmem [shape: bf16[256,1], index: 5, kind: input, shape index: {}]   ;;  %s849_s6 = inlined_call_operand.<no memory space> [shape: f32[1,1], index: 6, kind: input, shape index: {}]   ;;  %s850_s7 = inlined_call_operand.vmem [shape: f32[2,1], index: 7, kind: output, shape index: {}]  }
   0x1   :  { %v12_v0 = vstv %s849_s6 }
   0x2   :  { %13 = vst [vmem:[#allocation2] sm:$0x1] %v12_v0 }
   0x3   :  { %14 = vsyncpa [#allocation4], 0  ;;  %s718_s26 = smov [#allocation3]   ;;  %s694_s30 = scalar_lea.hbm %s846_s3, 4096 }
   0x4   :  { %s26_s27 = sshll.u32 %s718_s26, 4  ;;  %p695_p0 = scmp.ne.s32.totalorder %s846_s3, %s694_s30  ;;  %s27_s27 = int_to_ptr.vmem [resolvable:$true] %s26_s27 }
   0x5   :  { %p698_p1 = scmp.lt.u32.totalorder %s694_s30, %s846_s3 }
   0x7   :  { %p700_p2 = pnand %p698_p1, %p695_p0 }
   0x9   :  { %703 = shalt.err (!%p700_p2)
}
   0xa   :  { %s704_s6 = scalar_lea.vmem %s27_s27, 4096  ;;  %p709_p4 = scmp.lt.s32.totalorder %s27_s27, %s27_s27 }
   0xb   :  { %p705_p3 = scmp.ne.s32.totalorder %s27_s27, %s704_s6  ;;  %p710_p5 = scmp.lt.s32.totalorder %s704_s6, %s704_s6 }
   0xd   :  { %p711_p6 = por %p710_p5, %p709_p4 }
   0xf   :  { %p712_p7 = pnand %p711_p6, %p705_p3 }
  0x11   :  { %715 = shalt.err (!%p712_p7)
}
  0x12   :  { %s719_s12 = smov 128   ;;  %s720_s13 = smov 8  }
  0x13   :  { %32 = dma.hbm_to_vmem [thread:$0]  %s846_s3, 4096, %s27_s27, [#allocation4], %s719_s12, %s719_s12, %s720_s13  }
  0x14   :  { %716 = dma.done.wait [#allocation4], 4096  }
  0x15   :  { %717 = vsyncadd [#allocation4], 4294963200  ;;  %v721_v1 = vmov 0   ;;  %v627_v2 = vld [vmem:[%s844_s1 + $0x4] ss:$8 sps:$4 sm:$0xff]   ;;  %vm135_vm0 = vcmask 130048   ;;  %v115_v50 = vlaneseq }
  0x16   :  { %171 = vmatprep.mubr.bf16.mxu0 %v721_v1  ;;  %v629_v3 = vld [vmem:[%s844_s1] ss:$8 sps:$4 sm:$0xff]   ;;  %139 = vmatprep.subr.bf16.mxu0 %v627_v2  ;;  %v635_v9 = vld [vmem:[#allocation3 + $0x10] ss:$8 sps:$4 sm:$0xff]   ;;  %vm542_vm1 = vcmask 1024  }
  0x17   :  { %v43_v4 = vld [vmem:[%s843_s0] sm:$0x3]  ;;  %v630_v6 = vld [vmem:[#allocation3 + $0x4] ss:$8 sps:$4 sm:$0xff]   ;;  %140 = vmatpush1.bf16.msra.mxu0 %v629_v3  ;;  %v641_v13 = vld [vmem:[#allocation3 + $0x30] ss:$8 sps:$4 sm:$0xff]  }
  0x18   :  { %v113_v5 = vpack.c.bf16 %v43_v4, %v43_v4  ;;  %v632_v7 = vld [vmem:[#allocation3] ss:$8 sps:$4 sm:$0xff]   ;;  %v633_v8 = vld [vmem:[#allocation3 + $0x14] ss:$8 sps:$4 sm:$0xff]   ;;  %355 = vmatprep.subr.bf16.mxu1 %v630_v6  ;;  %v636_v10 = vld [vmem:[#allocation3 + $0x24] ss:$8 sps:$4 sm:$0xff]  }
  0x19   :  { %356 = vmatpush1.bf16.msra.mxu1 %v632_v7  ;;  %v638_v11 = vld [vmem:[#allocation3 + $0x20] ss:$8 sps:$4 sm:$0xff]   ;;  %v639_v12 = vld [vmem:[#allocation3 + $0x34] ss:$8 sps:$4 sm:$0xff]   ;;  %v642_v14 = vld [vmem:[#allocation3 + $0x44] ss:$8 sps:$4 sm:$0xff]  }
  0x1a   :  { %551 = vmatmul.mubr.msk.bf16.vlgmr.msra.gmra.mrb[0].mxu0 %vm135_vm0, %v113_v5  ;;  %357 = vmatprep.subr.bf16.mxu1 %v633_v8  ;;  %v644_v15 = vld [vmem:[#allocation3 + $0x40] ss:$8 sps:$4 sm:$0xff]   ;;  %v645_v16 = vld [vmem:[#allocation3 + $0x54] ss:$8 sps:$4 sm:$0xff]   ;;  %v647_v17 = vld [vmem:[#allocation3 + $0x50] ss:$8 sps:$4 sm:$0xff]  }
  0x1b   :  { %v648_v18 = vld [vmem:[#allocation3 + $0x64] ss:$8 sps:$4 sm:$0xff]   ;;  %v650_v19 = vld [vmem:[#allocation3 + $0x60] ss:$8 sps:$4 sm:$0xff]   ;;  %v651_v20 = vld [vmem:[#allocation3 + $0x74] ss:$8 sps:$4 sm:$0xff]  }
  0x1c   :  { %v653_v21 = vld [vmem:[#allocation3 + $0x70] ss:$8 sps:$4 sm:$0xff]   ;;  %v654_v22 = vld [vmem:[#allocation3 + $0x84] ss:$8 sps:$4 sm:$0xff]   ;;  %v656_v23 = vld [vmem:[#allocation3 + $0x80] ss:$8 sps:$4 sm:$0xff]  }
  0x1d   :  { %358 = vmatpush1.bf16.msra.mxu1 %v635_v9  ;;  %v657_v24 = vld [vmem:[#allocation3 + $0x94] ss:$8 sps:$4 sm:$0xff]   ;;  %v659_v25 = vld [vmem:[#allocation3 + $0x90] ss:$8 sps:$4 sm:$0xff]   ;;  %v660_v26 = vld [vmem:[#allocation3 + $0xa4] ss:$8 sps:$4 sm:$0xff]  }
  0x1e   :  { %359 = vmatprep.subr.bf16.mxu1 %v636_v10  ;;  %v662_v27 = vld [vmem:[#allocation3 + $0xa0] ss:$8 sps:$4 sm:$0xff]   ;;  %v663_v28 = vld [vmem:[#allocation3 + $0xb4] ss:$8 sps:$4 sm:$0xff]   ;;  %v665_v29 = vld [vmem:[#allocation3 + $0xb0] ss:$8 sps:$4 sm:$0xff]  }
  0x1f   :  { %v666_v30 = vld [vmem:[#allocation3 + $0xc4] ss:$8 sps:$4 sm:$0xff]   ;;  %v668_v31 = vld [vmem:[#allocation3 + $0xc0] ss:$8 sps:$4 sm:$0xff]   ;;  %v669_v32 = vld [vmem:[#allocation3 + $0xd4] ss:$8 sps:$4 sm:$0xff]  }
  0x20   :  { %v671_v33 = vld [vmem:[#allocation3 + $0xd0] ss:$8 sps:$4 sm:$0xff]   ;;  %v672_v34 = vld [vmem:[#allocation3 + $0xe4] ss:$8 sps:$4 sm:$0xff]   ;;  %v674_v35 = vld [vmem:[#allocation3 + $0xe0] ss:$8 sps:$4 sm:$0xff]  }
  0x21   :  { %360 = vmatpush1.bf16.msra.mxu1 %v638_v11  ;;  %v675_v36 = vld [vmem:[#allocation3 + $0xf4] ss:$8 sps:$4 sm:$0xff]   ;;  %v677_v37 = vld [vmem:[#allocation3 + $0xf0] ss:$8 sps:$4 sm:$0xff]   ;;  %v680_v40 = vld [vmem:[%s848_s5 + $0x48] sm:$0xff]   ;;  %v116_v51 = vshrl.u32 %v115_v50, 7 }
  0x22   :  { %361 = vmatprep.subr.bf16.mxu1 %v639_v12  ;;  %v678_v38 = vld [vmem:[%s848_s5 + $0x40] sm:$0xff]   ;;  %v681_v41 = vld [vmem:[%s848_s5 + $0x8] sm:$0xff]   ;;  %v682_v42 = vld [vmem:[%s848_s5 + $0x50] sm:$0xff]  }
  0x23   :  { %v679_v39 = vld [vmem:[%s848_s5] sm:$0xff]   ;;  %601 = vmatprep.subr.bf16.mxu0 %v678_v38  ;;  %v683_v43 = vld [vmem:[%s848_s5 + $0x10] sm:$0xff]   ;;  %v684_v44 = vld [vmem:[%s848_s5 + $0x58] sm:$0xff]   ;;  %v117_v52 = vsub.s32 0, %v116_v51  ;;  %v121_v54 = vsub.s32 1, %v116_v51 }
  0x24   :  { %602 = vmatpush3.bf16.msra.mxu0 %v679_v39  ;;  %v685_v45 = vld [vmem:[%s848_s5 + $0x18] sm:$0xff]   ;;  %v686_v46 = vld [vmem:[%s848_s5 + $0x60] sm:$0xff]   ;;  %v688_v48 = vld [vmem:[%s848_s5 + $0x68] sm:$0xff]  }
  0x25   :  { %362 = vmatpush1.bf16.msra.mxu1 %v641_v13  ;;  %603 = vmatprep.subr.bf16.mxu0 %v680_v40  ;;  %v687_v47 = vld [vmem:[%s848_s5 + $0x20] sm:$0xff]   ;;  %v689_v49 = vld [vmem:[%s848_s5 + $0x28] sm:$0xff]   ;;  %v690_v3 = vld [vmem:[%s848_s5 + $0x70] sm:$0xff]  }
  0x26   :  { %363 = vmatprep.subr.bf16.mxu1 %v642_v14  ;;  %v46_v53 = vld [vmem:[%s845_s2] sm:$0x3]  ;;  %v691_v4 = vld [vmem:[%s848_s5 + $0x30] sm:$0xff]   ;;  %v692_v5 = vld [vmem:[%s848_s5 + $0x78] sm:$0xff]  }
  0x27   :  { %v118_v55 = vrot.slane %v46_v53, %v117_v52  ;;  %v122_v56 = vrot.slane %v46_v53, %v121_v54  ;;  %v693_v6 = vld [vmem:[%s848_s5 + $0x38] sm:$0xff]   ;;  %v79_v7 = vld [vmem:[%s847_s4] sm:$0x3] }
  0x28   :  { %604 = vmatpush3.bf16.msra.mxu0 %v681_v41  ;;  %v188_v8 = vrot.slane %v79_v7, %v117_v52  ;;  %v192_v9 = vrot.slane %v79_v7, %v121_v54 }
  0x29   :  { %364 = vmatpush1.bf16.msra.mxu1 %v644_v15  ;;  %605 = vmatprep.subr.bf16.mxu0 %v682_v42 }
  0x2a   :  { %365 = vmatprep.subr.bf16.mxu1 %v645_v16 }
  0x2c   :  { %606 = vmatpush3.bf16.msra.mxu0 %v683_v43 }
  0x2d   :  { %366 = vmatpush1.bf16.msra.mxu1 %v647_v17  ;;  %607 = vmatprep.subr.bf16.mxu0 %v684_v44 }
  0x2e   :  { %367 = vmatprep.subr.bf16.mxu1 %v648_v18 }
  0x30   :  { %608 = vmatpush3.bf16.msra.mxu0 %v685_v45 }
  0x31   :  { %368 = vmatpush1.bf16.msra.mxu1 %v650_v19  ;;  %609 = vmatprep.subr.bf16.mxu0 %v686_v46 }
  0x32   :  { %369 = vmatprep.subr.bf16.mxu1 %v651_v20 }
  0x34   :  { %610 = vmatpush3.bf16.msra.mxu0 %v687_v47 }
  0x35   :  { %370 = vmatpush1.bf16.msra.mxu1 %v653_v21  ;;  %611 = vmatprep.subr.bf16.mxu0 %v688_v48  ;;  %v584_v21 = vld [vmem:[#allocation2] ss:$0 sm:$0xff] }
  0x36   :  { %371 = vmatprep.subr.bf16.mxu1 %v654_v22 }
  0x38   :  { %612 = vmatpush3.bf16.msra.mxu0 %v689_v49 }
  0x39   :  { %372 = vmatpush1.bf16.msra.mxu1 %v656_v23  ;;  %613 = vmatprep.subr.bf16.mxu0 %v690_v3 }
  0x3a   :  { %373 = vmatprep.subr.bf16.mxu1 %v657_v24 }
  0x3c   :  { %614 = vmatpush3.bf16.msra.mxu0 %v691_v4 }
  0x3d   :  { %374 = vmatpush1.bf16.msra.mxu1 %v659_v25  ;;  %615 = vmatprep.subr.bf16.mxu0 %v692_v5 }
  0x3e   :  { %375 = vmatprep.subr.bf16.mxu1 %v660_v26 }
  0x40   :  { %616 = vmatpush3.bf16.msra.mxu0 %v693_v6 }
  0x41   :  { %376 = vmatpush1.bf16.msra.mxu1 %v662_v27 }
  0x42   :  { %377 = vmatprep.subr.bf16.mxu1 %v663_v28 }
  0x45   :  { %378 = vmatpush1.bf16.msra.mxu1 %v665_v29 }
  0x46   :  { %379 = vmatprep.subr.bf16.mxu1 %v666_v30 }
  0x49   :  { %380 = vmatpush1.bf16.msra.mxu1 %v668_v31 }
  0x4a   :  { %381 = vmatprep.subr.bf16.mxu1 %v669_v32 }
  0x4d   :  { %382 = vmatpush1.bf16.msra.mxu1 %v671_v33 }
  0x4e   :  { %383 = vmatprep.subr.bf16.mxu1 %v672_v34 }
  0x51   :  { %384 = vmatpush1.bf16.msra.mxu1 %v674_v35 }
  0x52   :  { %385 = vmatprep.subr.bf16.mxu1 %v675_v36 }
  0x55   :  { %386 = vmatpush1.bf16.msra.mxu1 %v677_v37 }
  0xed   :  { %v173_v57 = vpop.f32.mrb[0].mxu0 }
  0xee   :  { %v174_v58 = vadd.f32 %v173_v57, %v118_v55  ;;  %v175_v59 = vpop.f32.mrb[1].mxu0 }
  0xef   :  { %v176_v60 = vadd.f32 %v175_v59, %v122_v56  ;;  %v177_v61 = vpop.f32.mrb[2].mxu0 }
  0xf0   :  { %v180_v62 = vmax.f32 %v174_v58, 0.0  ;;  %v178_v63 = vpop.f32.mrb[3].mxu0 }
  0xf1   :  { %v181_v0 = vmax.f32 %v176_v60, 0.0 }
  0xf2   :  { %v182_v2 = vpack.c.bf16 %v180_v62, %v180_v62 }
  0xf3   :  { %v183_v1 = vpack.c.bf16 %v181_v0, %v181_v0 }
  0xf5   :  { %387 = vmatprep.mubr.bf16.mxu1 %v183_v1 }
  0xf6   :  { %388 = vmatmul.mubr.bf16.vlgmr.msra.gmra.mrb[0].mxu1 %v182_v2 }
 0x1c9   :  { %v389_v10 = vpop.f32.mrb[0].mxu1 }
 0x1ca   :  { %v390_v11 = vadd.f32 %v389_v10, %v188_v8  ;;  %v391_v12 = vpop.f32.mrb[1].mxu1 }
 0x1cb   :  { %v392_v13 = vadd.f32 %v391_v12, %v192_v9  ;;  %v393_v14 = vpop.f32.mrb[2].mxu1 }
 0x1cc   :  { %v396_v15 = vmax.f32 %v390_v11, 0.0  ;;  %v394_v16 = vpop.f32.mrb[3].mxu1 }
 0x1cd   :  { %v397_v17 = vmax.f32 %v392_v13, 0.0 }
 0x1ce   :  { %v398_v19 = vpack.c.bf16 %v396_v15, %v396_v15 }
 0x1cf   :  { %v399_v18 = vpack.c.bf16 %v397_v17, %v397_v17 }
 0x1d1   :  { %534 = vmatprep.mubr.bf16.mxu0 %v399_v18 }
 0x1d2   :  { %535 = vmatmul.mubr.bf16.vlgmr.msra.gmra.mrb[4].mxu0 %v398_v19 }
 0x2a5   :  { %v617_v20 = vpop.f32.mrb[4].mxu0 }
 0x2a6   :  { %v618_v22 = vpop.f32.mrb[5].mxu0 }
 0x2a7   :  { %v619_v23 = vadd.f32 %v618_v22, %v617_v20  ;;  %v620_v24 = vpop.f32.mrb[6].mxu0 }
 0x2a8   :  { %v621_v25 = vpop.f32.mrb[7].mxu0 }
 0x2a9   :  { %v537_v26 = vadd.f32 %v619_v23, %v584_v21 }
 0x2ab   :  { %543 = vst.msk [vmem:[%s850_s7] sm:$0x3] %vm542_vm1, %v537_v26 }
 0x2ac   :  { %548 = vsyncpa [#allocation4], 1 }

</bundles_post_ra>
